<compile_context>
chip_gen: v6e
topology: v6e:2x2x1
jax: 0.10.0
libtpu: 0.0.40
codegen_flags: <defaults>
</compile_context>

<pallas_src>
import jax
import jax.numpy as jnp
from jax import lax
from jax.experimental import pallas as pl
from jax.experimental.pallas import tpu as pltpu


def _physical_vmem_bytes():
    """Best-effort physical VMEM query; conservative (v7x) fallback."""
    try:
        info = pltpu.get_tpu_info()
        v = getattr(info, "vmem_capacity_bytes", None)
        if v:
            return int(v)
    except Exception:
        pass
    return 64 * 2**20


def _vmem_limit(est_bytes, phys_bytes):
    return int(min(int(0.78 * phys_bytes), max(32 * 2**20, int(1.4 * est_bytes))))


def _softmax_axis0(g):
    """Softmax over axis 0 of the small (M, M) transposed gram matrix (f32)."""
    mx = jnp.max(g, axis=0, keepdims=True)
    e = jnp.exp(g - mx)
    s = jnp.sum(e, axis=0, keepdims=True)
    return e / s


# --------------------------------------------------------------------------
# Fused path: one grid step per batch, full (C, hw) slab resident in VMEM.
# --------------------------------------------------------------------------
def _make_fused_kernel(hw):
    inv_sqrt_hw = 1.0 / float(hw) ** 0.5

    def kernel(x_ref, ws_ref, bs_ref, wp_ref, bp_ref, we_ref, be_ref, out_ref):
        x = x_ref[0]                                   # (C, hw) f32 (NCHW slab)
        x_bf = x.astype(jnp.bfloat16)

        # state[k, i] = sum_c x[c, k] * ws[c, i] + bs[i]        -> (hw, M)
        state = lax.dot_general(
            x_bf, ws_ref[...],
            dimension_numbers=(((0,), (0,)), ((), ())),
            preferred_element_type=jnp.float32) + bs_ref[...]
        # proj[j, k] = sum_c wp[c, j] * x[c, k] + bp[j]         -> (M, hw)
        proj = lax.dot_general(
            wp_ref[...], x_bf,
            dimension_numbers=(((0,), (0,)), ((), ())),
            preferred_element_type=jnp.float32) + bp_ref[...]
        proj_bf = proj.astype(jnp.bfloat16)

        # gramT[j, i] = sum_k proj[j, k] * state[k, i]  ( = rproj_pre[i, j] )
        gramt = lax.dot_general(
            proj_bf, state.astype(jnp.bfloat16),
            dimension_numbers=(((1,), (0,)), ((), ())),
            preferred_element_type=jnp.float32) * inv_sqrt_hw
        a = _softmax_axis0(gramt)                      # a[j, i] = rproj[i, j]

        # W_combT[j, c] = sum_i rproj[i, j] * w_ext[c, i]       -> (M, C)
        wcomb_t = jnp.dot(a.astype(jnp.bfloat16), we_ref[...],
                          preferred_element_type=jnp.float32)
        # ext[c, k] = sum_j W_combT[j, c] * proj[j, k] + be[c]  -> (C, hw)
        ext = lax.dot_general(
            wcomb_t.astype(jnp.bfloat16), proj_bf,
            dimension_numbers=(((0,), (0,)), ((), ())),
            preferred_element_type=jnp.float32) + be_ref[...]

        out_ref[0] = (x + ext).astype(out_ref.dtype)

    return kernel


# --------------------------------------------------------------------------
# Tiled path, pass 1: accumulate the (M, M) gram over hw tiles, then softmax
# and fold the extend weight in -> output W_combT of shape (n, M, C).
# --------------------------------------------------------------------------
def _make_gram_kernel(hw):
    inv_sqrt_hw = 1.0 / float(hw) ** 0.5

    def kernel(x_ref, ws_ref, bs_ref, wp_ref, bp_ref, we_ref, wcomb_ref, acc_ref):
        t = pl.program_id(1)

        @pl.when(t == 0)
        def _():
            acc_ref[...] = jnp.zeros_like(acc_ref)

        x_bf = x_ref[0].astype(jnp.bfloat16)           # (C, t_hw)
        state = lax.dot_general(
            x_bf, ws_ref[...],
            dimension_numbers=(((0,), (0,)), ((), ())),
            preferred_element_type=jnp.float32) + bs_ref[...]
        proj = lax.dot_general(
            wp_ref[...], x_bf,
            dimension_numbers=(((0,), (0,)), ((), ())),
            preferred_element_type=jnp.float32) + bp_ref[...]
        acc_ref[...] += lax.dot_general(
            proj.astype(jnp.bfloat16), state.astype(jnp.bfloat16),
            dimension_numbers=(((1,), (0,)), ((), ())),
            preferred_element_type=jnp.float32)

        @pl.when(t == pl.num_programs(1) - 1)
        def _():
            a = _softmax_axis0(acc_ref[...] * inv_sqrt_hw)
            wcomb_ref[0] = jnp.dot(a.astype(jnp.bfloat16), we_ref[...],
                                   preferred_element_type=jnp.float32)

    return kernel


# --------------------------------------------------------------------------
# Tiled path, pass 2: recompute proj per tile, apply W_combT, residual add.
# --------------------------------------------------------------------------
def _apply_kernel(x_ref, wcomb_ref, wp_ref, bp_ref, be_ref, out_ref):
    x = x_ref[0]                                       # (C, t_hw) f32
    x_bf = x.astype(jnp.bfloat16)
    proj = lax.dot_general(
        wp_ref[...], x_bf,
        dimension_numbers=(((0,), (0,)), ((), ())),
        preferred_element_type=jnp.float32) + bp_ref[...]
    ext = lax.dot_general(
        wcomb_ref[0].astype(jnp.bfloat16), proj.astype(jnp.bfloat16),
        dimension_numbers=(((0,), (0,)), ((), ())),
        preferred_element_type=jnp.float32) + be_ref[...]
    out_ref[0] = (x + ext).astype(out_ref.dtype)


# --------------------------------------------------------------------------
# Wrapper
# --------------------------------------------------------------------------
def glore_unit_pallas(x_nchw, params, *, force_tiled=False, hw_tile=None):
    """x_nchw: (n, C, h, w) float32.  params: dict of 1x1 conv weights/biases."""
    n, c, h, w = x_nchw.shape
    hw = h * w
    m = params["w_state"].shape[0]

    # NCHW kept as-is: only a contiguous (free) reshape, no transpose / pad.
    x = x_nchw.reshape(n, c, hw).astype(jnp.float32)

    # Contraction-friendly weight layouts (cheap HBM ops on tiny arrays).
    ws = params["w_state"].T.astype(jnp.bfloat16)      # (C, M)
    wp = params["w_proj"].T.astype(jnp.bfloat16)       # (C, M)
    we = params["w_extend"].T.astype(jnp.bfloat16)     # (M, C)
    bs = params["b_state"].reshape(1, m).astype(jnp.float32)   # +(hw, M)
    bp = params["b_proj"].reshape(m, 1).astype(jnp.float32)    # +(M, hw)
    be = params["b_extend"].reshape(c, 1).astype(jnp.float32)  # +(C, hw)

    weight_bytes = int((ws.size + wp.size + we.size) * 2
                       + (bs.size + bp.size + be.size) * 4)
    flops = int(n * (4 * hw * c * m + 2 * hw * m * m + 2 * m * m * c
                     + 2 * hw * m * c))
    transc = int(n * m * m)
    io_bytes = int(2 * n * c * hw * 4 + weight_bytes)

    def full_spec(a):
        zeros = (0,) * a.ndim
        return pl.BlockSpec(a.shape, lambda *_: zeros)

    # ---- generation-aware path selection ----------------------------------
    phys_vmem = _physical_vmem_bytes()
    slab = c * hw * 4
    fused_est = int(5.5 * slab + 3 * hw * m * 4 + 4 * m * m * 4
                    + 2 * weight_bytes + (1 << 20))
    use_fused = (not force_tiled) and fused_est <= phys_vmem // 2

    if use_fused:
        out = pl.pallas_call(
            _make_fused_kernel(hw),
            out_shape=jax.ShapeDtypeStruct((n, c, hw), jnp.float32),
            grid_spec=pltpu.PrefetchScalarGridSpec(
                num_scalar_prefetch=0,
                grid=(n,),
                in_specs=[
                    pl.BlockSpec((1, c, hw), lambda b: (b, 0, 0)),
                    full_spec(ws), full_spec(bs),
                    full_spec(wp), full_spec(bp),
                    full_spec(we), full_spec(be),
                ],
                out_specs=pl.BlockSpec((1, c, hw), lambda b: (b, 0, 0)),
            ),
            compiler_params=pltpu.CompilerParams(
                dimension_semantics=("parallel",),
                vmem_limit_bytes=_vmem_limit(fused_est, phys_vmem)),
            cost_estimate=pl.CostEstimate(
                flops=flops, transcendentals=transc, bytes_accessed=io_bytes),
        )(x, ws, bs, wp, bp, we, be)
    else:
        # Pick an hw tile (lane axis): multiple of 128 dividing hw, capped by
        # a generation-aware byte budget; fall back to full hw (always legal).
        if hw_tile is not None:
            t_hw = int(hw_tile)
            assert hw % t_hw == 0 and (t_hw % 128 == 0 or t_hw == hw)
        else:
            cap_bytes = 4 * 2**20 if phys_vmem <= 80 * 2**20 else 12 * 2**20
            t_max = max(128, (cap_bytes // (c * 4)) // 128 * 128)
            t_hw = hw
            best = None
            t = 128
            while t <= min(hw, t_max):
                if hw % t == 0:
                    best = t
                t += 128
            if best is not None:
                t_hw = best
        n_t = hw // t_hw

        tile_slab = c * t_hw * 4
        tiled_est = int(6 * tile_slab + 3 * t_hw * m * 4 + 4 * m * m * 4
                        + 2 * weight_bytes + (1 << 20))
        vmem = _vmem_limit(tiled_est, phys_vmem)

        # Pass 1: gram accumulation over hw tiles -> softmax -> W_combT (M, C).
        wcomb = pl.pallas_call(
            _make_gram_kernel(hw),
            out_shape=jax.ShapeDtypeStruct((n, m, c), jnp.float32),
            grid_spec=pltpu.PrefetchScalarGridSpec(
                num_scalar_prefetch=0,
                grid=(n, n_t),
                in_specs=[
                    pl.BlockSpec((1, c, t_hw), lambda b, t: (b, 0, t)),
                    full_spec(ws), full_spec(bs),
                    full_spec(wp), full_spec(bp),
                    full_spec(we),
                ],
                out_specs=pl.BlockSpec((1, m, c), lambda b, t: (b, 0, 0)),
                scratch_shapes=[pltpu.VMEM((m, m), jnp.float32)],
            ),
            compiler_params=pltpu.CompilerParams(
                dimension_semantics=("parallel", "arbitrary"),
                vmem_limit_bytes=vmem),
            cost_estimate=pl.CostEstimate(
                flops=int(n * (4 * hw * c * m + 2 * hw * m * m + 2 * m * m * c)),
                transcendentals=transc,
                bytes_accessed=int(n * c * hw * 4 + weight_bytes)),
        )(x, ws, bs, wp, bp, we)

        # Pass 2: proj per tile, apply W_combT, residual, NCHW store.
        out = pl.pallas_call(
            _apply_kernel,
            out_shape=jax.ShapeDtypeStruct((n, c, hw), jnp.float32),
            grid_spec=pltpu.PrefetchScalarGridSpec(
                num_scalar_prefetch=0,
                grid=(n, n_t),
                in_specs=[
                    pl.BlockSpec((1, c, t_hw), lambda b, t: (b, 0, t)),
                    pl.BlockSpec((1, m, c), lambda b, t: (b, 0, 0)),
                    full_spec(wp), full_spec(bp), full_spec(be),
                ],
                out_specs=pl.BlockSpec((1, c, t_hw), lambda b, t: (b, 0, t)),
            ),
            compiler_params=pltpu.CompilerParams(
                dimension_semantics=("parallel", "parallel"),
                vmem_limit_bytes=vmem),
            cost_estimate=pl.CostEstimate(
                flops=int(n * (2 * hw * c * m + 2 * hw * m * c)),
                transcendentals=0,
                bytes_accessed=int(2 * n * c * hw * 4 + n * m * c * 4
                                   + weight_bytes)),
        )(x, wcomb, wp, bp, be)

    return out.reshape(n, c, h, w)        # free reshape back to NCHW


# --------------------------------------------------------------------------
# Pure-JAX reference + demo
# --------------------------------------------------------------------------
def glore_unit_ref(x, params):
    """Pure-JAX f32 reference mirroring the PyTorch forward (NCHW)."""
    n, c, h, w = x.shape
    hw = h * w

    def conv1x1(inp, wgt, b):
        return jnp.einsum("nchw,oc->nohw", inp, wgt) + b[None, :, None, None]

    x_state = conv1x1(x, params["w_state"], params["b_state"]).reshape(n, -1, hw)
    x_proj = conv1x1(x, params["w_proj"], params["b_proj"]).reshape(n, -1, hw)
    x_rproj = jnp.einsum("nmk,npk->nmp", x_state, x_proj) / jnp.sqrt(hw)
    x_rproj = jax.nn.softmax(x_rproj, axis=2)
    x_rstate = jnp.einsum("nmp,npk->nmk", x_rproj, x_proj)
    x_rstate = x_rstate.reshape(n, -1, h, w)
    return x + conv1x1(x_rstate, params["w_extend"], params["b_extend"])


def make_params(key, in_channels, out_channels):
    ks = jax.random.split(key, 6)
    scale = 0.1
    return {
        "w_state": scale * jax.random.normal(ks[0], (out_channels, in_channels), jnp.float32),
        "b_state": scale * jax.random.normal(ks[1], (out_channels,), jnp.float32),
        "w_proj": scale * jax.random.normal(ks[2], (out_channels, in_channels), jnp.float32),
        "b_proj": scale * jax.random.normal(ks[3], (out_channels,), jnp.float32),
        "w_extend": scale * jax.random.normal(ks[4], (in_channels, out_channels), jnp.float32),
        "b_extend": scale * jax.random.normal(ks[5], (in_channels,), jnp.float32),
    }


if __name__ == "__main__":
    key = jax.random.PRNGKey(0)
    k_x, k_p = jax.random.split(key)

    batch, in_channels, out_channels, h, w = 2, 4, 8, 16, 16
    x = jax.random.normal(k_x, (batch, in_channels, h, w), jnp.float32)
    params = make_params(k_p, in_channels, out_channels)

    ref = glore_unit_ref(x, params)

    # Fused (full-hw per batch) path.
    out_fused = jax.block_until_ready(glore_unit_pallas(x, params))
    # Two-pass hw-tiled path (exercise the gram accumulator across 2 tiles).
    out_tiled = jax.block_until_ready(
        glore_unit_pallas(x, params, force_tiled=True, hw_tile=128))

    for name, out in (("fused", out_fused), ("tiled", out_tiled)):
        assert out.shape == ref.shape == (batch, in_channels, h, w)
        err = float(jnp.max(jnp.abs(out - ref)))
        assert err < 2e-2, f"{name} path mismatch vs reference: max abs err {err}"

    print("KERNEL_OK")
</pallas_src>

<mosaic_0001>
module attributes {stable_mosaic.version = 11 : i64} {
  func.func @kernel(%arg0: i32, %arg1: memref<1x4x256xf32, #tpu.memory_space<vmem>>, %arg2: memref<4x8xbf16, #tpu.memory_space<vmem>>, %arg3: memref<1x8xf32, #tpu.memory_space<vmem>>, %arg4: memref<4x8xbf16, #tpu.memory_space<vmem>>, %arg5: memref<8x1xf32, #tpu.memory_space<vmem>>, %arg6: memref<8x4xbf16, #tpu.memory_space<vmem>>, %arg7: memref<4x1xf32, #tpu.memory_space<vmem>>, %arg8: memref<1x4x256xf32, #tpu.memory_space<vmem>>) attributes {dimension_semantics = [#tpu.dimension_semantics<parallel>], iteration_bounds = array<i64: 2>, scalar_prefetch = 0 : i64, scratch_operands = 0 : i64, tpu.core_type = #tpu.core_type<tc>, window_params = [{transform_indices = @transform_0, window_bounds = array<i64: 1, 4, 256>}, {pipeline_mode = #tpu.pipeline_mode<synchronous>, transform_indices = @transform_1, window_bounds = array<i64: 4, 8>}, {pipeline_mode = #tpu.pipeline_mode<synchronous>, transform_indices = @transform_2, window_bounds = array<i64: 1, 8>}, {pipeline_mode = #tpu.pipeline_mode<synchronous>, transform_indices = @transform_3, window_bounds = array<i64: 4, 8>}, {pipeline_mode = #tpu.pipeline_mode<synchronous>, transform_indices = @transform_4, window_bounds = array<i64: 8, 1>}, {pipeline_mode = #tpu.pipeline_mode<synchronous>, transform_indices = @transform_5, window_bounds = array<i64: 8, 4>}, {pipeline_mode = #tpu.pipeline_mode<synchronous>, transform_indices = @transform_6, window_bounds = array<i64: 4, 1>}, {transform_indices = @transform_7, window_bounds = array<i64: 1, 4, 256>}]} {
    %c0 = arith.constant 0 : index
    %c0_0 = arith.constant 0 : index
    %c0_1 = arith.constant 0 : index
    %0 = vector.load %arg1[%c0, %c0_0, %c0_1] : memref<1x4x256xf32, #tpu.memory_space<vmem>>, vector<1x4x256xf32>
    %1 = vector.shape_cast %0 : vector<1x4x256xf32> to vector<4x256xf32>
    %2 = arith.truncf %1 : vector<4x256xf32> to vector<4x256xbf16>
    %c0_2 = arith.constant 0 : index
    %c0_3 = arith.constant 0 : index
    %3 = vector.load %arg2[%c0_2, %c0_3] : memref<4x8xbf16, #tpu.memory_space<vmem>>, vector<4x8xbf16>
    %cst = arith.constant dense<0.000000e+00> : vector<256x8xf32>
    %4 = tpu.matmul %2, %3, %cst {dimension_numbers = #tpu.dot_dimension_numbers<[0], [0], [1], [1], [0, 1, 1, 1], [], []>} : vector<4x256xbf16>, vector<4x8xbf16>, vector<256x8xf32> -> vector<256x8xf32>
    %c0_4 = arith.constant 0 : index
    %c0_5 = arith.constant 0 : index
    %5 = vector.load %arg3[%c0_4, %c0_5] : memref<1x8xf32, #tpu.memory_space<vmem>>, vector<1x8xf32>
    %6 = vector.broadcast %5 : vector<1x8xf32> to vector<256x8xf32>
    %7 = arith.addf %4, %6 : vector<256x8xf32>
    %c0_6 = arith.constant 0 : index
    %c0_7 = arith.constant 0 : index
    %8 = vector.load %arg4[%c0_6, %c0_7] : memref<4x8xbf16, #tpu.memory_space<vmem>>, vector<4x8xbf16>
    %cst_8 = arith.constant dense<0.000000e+00> : vector<8x256xf32>
    %9 = tpu.matmul %8, %2, %cst_8 {dimension_numbers = #tpu.dot_dimension_numbers<[0], [0], [1], [1], [0, 1, 1, 1], [], []>} : vector<4x8xbf16>, vector<4x256xbf16>, vector<8x256xf32> -> vector<8x256xf32>
    %c0_9 = arith.constant 0 : index
    %c0_10 = arith.constant 0 : index
    %10 = vector.load %arg5[%c0_9, %c0_10] : memref<8x1xf32, #tpu.memory_space<vmem>>, vector<8x1xf32>
    %11 = vector.broadcast %10 : vector<8x1xf32> to vector<8x256xf32>
    %12 = arith.addf %9, %11 : vector<8x256xf32>
    %13 = arith.truncf %12 : vector<8x256xf32> to vector<8x256xbf16>
    %14 = arith.truncf %7 : vector<256x8xf32> to vector<256x8xbf16>
    %cst_11 = arith.constant dense<0.000000e+00> : vector<8x8xf32>
    %15 = tpu.matmul %13, %14, %cst_11 {dimension_numbers = #tpu.dot_dimension_numbers<[1], [0], [0], [1], [0, 0, 1, 1], [], []>} : vector<8x256xbf16>, vector<256x8xbf16>, vector<8x8xf32> -> vector<8x8xf32>
    %cst_12 = arith.constant 6.250000e-02 : f32
    %16 = vector.broadcast %cst_12 : f32 to vector<8x8xf32>
    %17 = arith.mulf %15, %16 : vector<8x8xf32>
    %cst_13 = arith.constant dense<0xFF800000> : vector<8xf32>
    %18 = vector.multi_reduction <maximumf>, %17, %cst_13 [0] : vector<8x8xf32> to vector<8xf32>
    %19 = vector.shape_cast %18 : vector<8xf32> to vector<1x8xf32>
    %20 = vector.broadcast %19 : vector<1x8xf32> to vector<8x8xf32>
    %21 = arith.subf %17, %20 : vector<8x8xf32>
    %22 = math.exp %21 : vector<8x8xf32>
    %cst_14 = arith.constant dense<0.000000e+00> : vector<8xf32>
    %23 = vector.multi_reduction <add>, %22, %cst_14 [0] : vector<8x8xf32> to vector<8xf32>
    %24 = vector.shape_cast %23 : vector<8xf32> to vector<1x8xf32>
    %25 = vector.broadcast %24 : vector<1x8xf32> to vector<8x8xf32>
    %26 = arith.divf %22, %25 : vector<8x8xf32>
    %27 = arith.truncf %26 : vector<8x8xf32> to vector<8x8xbf16>
    %c0_15 = arith.constant 0 : index
    %c0_16 = arith.constant 0 : index
    %28 = vector.load %arg6[%c0_15, %c0_16] : memref<8x4xbf16, #tpu.memory_space<vmem>>, vector<8x4xbf16>
    %cst_17 = arith.constant dense<0.000000e+00> : vector<8x4xf32>
    %29 = tpu.matmul %27, %28, %cst_17 {dimension_numbers = #tpu.dot_dimension_numbers<[1], [0], [0], [1], [0, 0, 1, 1], [], []>} : vector<8x8xbf16>, vector<8x4xbf16>, vector<8x4xf32> -> vector<8x4xf32>
    %30 = arith.truncf %29 : vector<8x4xf32> to vector<8x4xbf16>
    %cst_18 = arith.constant dense<0.000000e+00> : vector<4x256xf32>
    %31 = tpu.matmul %30, %13, %cst_18 {dimension_numbers = #tpu.dot_dimension_numbers<[0], [0], [1], [1], [0, 1, 1, 1], [], []>} : vector<8x4xbf16>, vector<8x256xbf16>, vector<4x256xf32> -> vector<4x256xf32>
    %c0_19 = arith.constant 0 : index
    %c0_20 = arith.constant 0 : index
    %32 = vector.load %arg7[%c0_19, %c0_20] : memref<4x1xf32, #tpu.memory_space<vmem>>, vector<4x1xf32>
    %33 = vector.broadcast %32 : vector<4x1xf32> to vector<4x256xf32>
    %34 = arith.addf %31, %33 : vector<4x256xf32>
    %35 = arith.addf %1, %34 : vector<4x256xf32>
    %c0_21 = arith.constant 0 : index
    %c0_22 = arith.constant 0 : index
    %c0_23 = arith.constant 0 : index
    %36 = vector.load %arg8[%c0_21, %c0_22, %c0_23] : memref<1x4x256xf32, #tpu.memory_space<vmem>>, vector<1x4x256xf32>
    %37 = vector.shape_cast %36 : vector<1x4x256xf32> to vector<4x256xf32>
    %38 = vector.shape_cast %35 : vector<4x256xf32> to vector<1x4x256xf32>
    tpu.vector_store %arg8[%c0_21, %c0_22, %c0_23], %38 {strides = array<i32>} : memref<1x4x256xf32, #tpu.memory_space<vmem>>, vector<1x4x256xf32>,
    return
  }
  func.func @transform_0(%arg0: i32) -> (i32, i32, i32) {
    %c0_i32 = arith.constant 0 : i32
    %c0_i32_0 = arith.constant 0 : i32
    %c0_i32_1 = arith.constant 0 : i32
    return %arg0, %c0_i32, %c0_i32_0 : i32, i32, i32
  }
  func.func @transform_1(%arg0: i32) -> (i32, i32) {
    %c0_i32 = arith.constant 0 : i32
    %c0_i32_0 = arith.constant 0 : i32
    %c0_i32_1 = arith.constant 0 : i32
    return %c0_i32, %c0_i32_0 : i32, i32
  }
  func.func @transform_2(%arg0: i32) -> (i32, i32) {
    %c0_i32 = arith.constant 0 : i32
    %c0_i32_0 = arith.constant 0 : i32
    %c0_i32_1 = arith.constant 0 : i32
    return %c0_i32, %c0_i32_0 : i32, i32
  }
  func.func @transform_3(%arg0: i32) -> (i32, i32) {
    %c0_i32 = arith.constant 0 : i32
    %c0_i32_0 = arith.constant 0 : i32
    %c0_i32_1 = arith.constant 0 : i32
    return %c0_i32, %c0_i32_0 : i32, i32
  }
  func.func @transform_4(%arg0: i32) -> (i32, i32) {
    %c0_i32 = arith.constant 0 : i32
    %c0_i32_0 = arith.constant 0 : i32
    %c0_i32_1 = arith.constant 0 : i32
    return %c0_i32, %c0_i32_0 : i32, i32
  }
  func.func @transform_5(%arg0: i32) -> (i32, i32) {
    %c0_i32 = arith.constant 0 : i32
    %c0_i32_0 = arith.constant 0 : i32
    %c0_i32_1 = arith.constant 0 : i32
    return %c0_i32, %c0_i32_0 : i32, i32
  }
  func.func @transform_6(%arg0: i32) -> (i32, i32) {
    %c0_i32 = arith.constant 0 : i32
    %c0_i32_0 = arith.constant 0 : i32
    %c0_i32_1 = arith.constant 0 : i32
    return %c0_i32, %c0_i32_0 : i32, i32
  }
  func.func @transform_7(%arg0: i32) -> (i32, i32, i32) {
    %c0_i32 = arith.constant 0 : i32
    %c0_i32_0 = arith.constant 0 : i32
    %c0_i32_1 = arith.constant 0 : i32
    return %arg0, %c0_i32, %c0_i32_0 : i32, i32, i32
  }
}

</mosaic_0001>

<bundles_post_ra>
// kernel: tpu_custom_call.1
= control target key start
LH: loop header
LB: loop body
LE: loop exit
PB: predicated region body
PF: predicated region fallthrough
CT: control target
= control target key end

     0   :  { %12 = vsyncpa [#allocation3], 0  ;;  %s1470_s0 = inlined_call_operand.vmem [shape: f32[2,4,256], index: 0, kind: input, shape index: {}]   ;;  %s1471_s1 = inlined_call_operand.vmem [shape: bf16[4,8], index: 1, kind: input, shape index: {}]   ;;  %s1472_s2 = inlined_call_operand.hbm [shape: f32[1,8], index: 2, kind: input, shape index: {}]   ;;  %s1473_s3 = inlined_call_operand.vmem [shape: bf16[4,8], index: 3, kind: input, shape index: {}]   ;;  %s1474_s4 = inlined_call_operand.vmem [shape: f32[8,1], index: 4, kind: input, shape index: {}]   ;;  %s1475_s5 = inlined_call_operand.vmem [shape: bf16[8,4], index: 5, kind: input, shape index: {}]   ;;  %s1476_s6 = inlined_call_operand.vmem [shape: f32[4,1], index: 6, kind: input, shape index: {}]   ;;  %s1477_s7 = inlined_call_operand.hbm [shape: f32[2,4,256], index: 7, kind: output, shape index: {}]  }
   0x1   :  { %13 = vsyncpa [#allocation4], 0 }
   0x2   :  { %15 = vsyncpa [#allocation4 + $0x1], 0  ;;  %s1234_s24 = smov 0   ;;  %s1236_s25 = smov 0  }
   0x3   :  { %s1238_s26 = smov 0   ;;  %s1240_s27 = smov 0  }
   0x4 LB: > { %s1255_s28 = sadd.s32 4294967295, %s1187_s27   ;;  %s917_s29 = sadd.s32 4294967294, %s1187_s27   ;;  %s1187_s27 = sphi %s1240_s27, %s1484_s27   ;;  %s1183_s26 = sphi %s1238_s26, %s1483_s26   ;;  %s1179_s25 = sphi %s1236_s25, %s1482_s25   ;;  %s1175_s24 = sphi %s1234_s24, %s1481_s24  }
   0x5   : > { %s1259_s30 = sadd.s32 1, %s1187_s27   ;;  %s180_s8 = sadd.s32 1, %s1183_s26 }
   0x6   : > { %s177_s9 = ssub.s32 %s1187_s27, %s1259_s30  ;;  %p190_p0 = scmp.ne.s32.totalorder %s1183_s26, %s1179_s25 }
   0x7   : > { %p178_p1 = scmp.eq.s32.totalorder %s177_s9, 0  ;;  %p191_p2 = scmp.eq.s32.totalorder %s1255_s28, 1 }
   0x8   : > { %p196_p3 = scmp.ne.s32.totalorder %s1179_s25, %s1175_s24  ;;  %p197_p4 = scmp.eq.s32.totalorder %s917_s29, 1 }
   0x9   : > { %s1270_s10 = scalar_select %p178_p1, %s1183_s26, %s180_s8  }
   0xa   : > { %p1272_p5 = por %p191_p2, %p190_p0  ;;  %p1276_p6 = por %p197_p4, %p196_p3 }
   0xb   : > { %p918_p7 = scmp.ge.s32.totalorder %s1187_s27, 1  ;;  %p204_p8 = scmp.lt.s32.totalorder %s1187_s27, 3 }
   0xc   : > { %p1051_p9 = scmp.eq.s32.totalorder %s1255_s28, 0  ;;  %s1189_s14 = smov [#allocation2]  }
   0xd   : > { %p1283_p10 = pnand %p918_p7, %p204_p8  ;;  %s220_s15 = sshll.u32 %s1189_s14, 4  ;;  %s221_s15 = int_to_ptr.vmem [resolvable:$true] %s220_s15 }
   0xe   : > { %s1108_s16 = scalar_lea.vmem %s221_s15, 16  ;;  %s1115_s17 = scalar_lea.vmem %s221_s15, 32 }
   0xf   : > { %p1043_p11 = pneg %p1283_p10  ;;  %p1109_p0 = scmp.ne.s32.totalorder %s221_s15, %s1108_s16 }
  0x10   : > { %p1116_p3 = scmp.lt.s32.totalorder %s221_s15, %s221_s15  ;;  %p1117_p4 = scmp.lt.s32.totalorder %s1115_s17, %s1108_s16 }
  0x11   : > { %p1044_p12 = pnand %p1051_p9, %p1043_p11 }
  0x12   : > { %p1118_p7 = por %p1117_p4, %p1116_p3 }
  0x13   : > { %p1099_p13 = pneg %p1044_p12 }
  0x15   : > { %p1111_p1 = pnand %p1109_p0, %p1099_p13 }
  0x17   : > { %p1112_p2 = pneg %p1111_p1 }
  0x19   : > { %p1119_p8 = pnand %p1118_p7, %p1112_p2 }
  0x1b   : > { %1122 = shalt.err (!%p1119_p8)
}
  0x1c   : > { %1046 = dma.hbm_to_vmem [thread:$0]  (!%p1044_p12), %s1472_s2, 16, %s221_s15, [#allocation3]  }
  0x1d   : > { %253 = sbr.rel (%p1283_p10) target bundleno = 1205 (0x4b5), region = 48 }
  0x22   : > { %1166 = dma.done.wait (%p1051_p9), [#allocation3], 16  }
  0x23   : > { %1168 = vsyncadd (%p1051_p9), [#allocation3], 4294967280  ;;  %p285_p11 = scmp.lt.s32.totalorder %s1255_s28, 1  ;;  %vm386_vm0 = vcmask 1041408   ;;  %v551_v1 = vld [vmem:[%s1473_s3] sm:$0x3] }
  0x24   : > { %558 = vxpose.xlu1.c.b16.start.end [1/1] (short) (narrow) %v551_v1, 16  ;;  %v297_v4 = vld [vmem:[%s1471_s1] sm:$0x3]  ;;  %v1190_v9 = vmov 0   ;;  %vm337_vm1 = vcmask 31744   ;;  %vm708_vm2 = vcmask 1043456  }
  0x25   : > { %s286_s20 = scalar_select %p285_p11, %s1255_s28, 1  ;;  %1036 = vmatprep.subr.msk.bf16.mxu0 %vm386_vm0, %v297_v4  ;;  %v388_v5 = vsel %vm386_vm0, %v297_v4, 0  ;;  %v552_v8 = vld [vmem:[%s1474_s4] sm:$0xff]  ;;  %615 = vmatprep.mubr.bf16.mxu1 %v1190_v9  ;;  %vm1192_vm3 = vmmov 0   ;;  %vm683_vm4 = vcmask 64512  }
  0x26   : > { %997 = vmatpush3.bf16.msra.mxu0 %v388_v5  ;;  %v1348_v35 = vld [vmem:[#allocation2] ss:$0 sm:$0xff]  ;;  %s954_s23 = sshll.u32 %s1255_s28, 7  ;;  %s1193_s17 = smov [#allocation5]  }
  0x27   : > { %s953_s21 = sshll.u32 %s286_s20, 3  ;;  %s844_s14 = scalar_lea.hbm %s1477_s7, %s954_s23 }
  0x28   : > { %s289_s29 = scalar_lea.vmem %s1470_s0, %s953_s21  ;;  %1090 = vset.pattern.permute.xlu1 %v1190_v9  ;;  %s282_s21 = sand.u32 1, %s1179_s25  }
  0x29   : > { %v1305_v0 = vld [vmem:[%s289_s29] sm:$0xff]  ;;  %555 = vperm.xlu1 %1090, %v552_v8   ;;  %s923_s22 = sshll.u32 %s282_s21, 3  ;;  %s832_s15 = scalar_lea.sflag [#allocation4], %s282_s21 }
  0x2a   : > { %v295_v2 = vpack.c.bf16 %v1305_v0, %v1305_v0  ;;  %v293_v3 = vcombine.high %v1305_v0, %v1305_v0  ;;  %s284_s29 = scalar_lea.vmem [#allocation5], %s923_s22  ;;  %s1127_s28 = sshll.u32 %s1193_s17, 4  ;;  %s1128_s28 = int_to_ptr.vmem [resolvable:$false] %s1127_s28 }
  0x2b   : > { %s846_s8 = sshll.u32 %s284_s29, 4  ;;  %s1129_s18 = scalar_lea.vmem %s1128_s28, 256  ;;  %s847_s8 = int_to_ptr.vmem [resolvable:$true] %s846_s8 }
  0x2c   : > { %305 = vxpose.xlu0.c.b16.start.end [1/1] (short) %v295_v2, 128  ;;  %v296_v6 = vpack.c.bf16 %v293_v3, %v293_v3  ;;  %v578_v7 = vsel %vm386_vm0, %v295_v2, 0  ;;  %s1123_s16 = scalar_lea.vmem %s847_s8, 128  ;;  %p1130_p13 = scmp.lt.s32.totalorder %s847_s8, %s1128_s28 }
  0x2d   : > { %p1124_p9 = scmp.ne.s32.totalorder %s847_s8, %s1123_s16  ;;  %p1131_p0 = scmp.lt.s32.totalorder %s1129_s18, %s1123_s16 }
  0x2e   : > { %943 = vmatprep.subr.msk.bf16.mxu1 %vm386_vm0, %v296_v6 }
  0x2f   : > { %598 = vmatpush1.bf16.msra.mxu1 %v578_v7  ;;  %p1125_p10 = pnand %p1124_p9, %p1272_p5  ;;  %p1132_p1 = por %p1131_p0, %p1130_p13 }
  0x31   : > { %p1126_p12 = pneg %p1125_p10 }
  0x33   : > { %p1133_p2 = pnand %p1132_p1, %p1126_p12 }
  0x49   : > { %321 = vxpose.xlu0.c.b16.start.end [1/1] (short) %v296_v6, 128 }
  0x52   : > { %1091 = vset.pattern.permute.xlu0 %v1190_v9 }
  0x86   : > { %v566_v10 = vpop.trf.xlu1 }
  0x87   : > { %944 = vmatmul.mubr.msk.bf16.vlgmr.msra.gmra.mxu1 %vm337_vm1, %v566_v10 }
  0x8e   : > { %v313_v11 = vpop.trf.xlu0 }
  0x8f   : > { %998 = vmatprep.mubr.msk.bf16.mxu0 %vm337_vm1, %v313_v11 }
  0x92   : > { %v314_v12 = vpop.trf.xlu0 }
  0x93   : > { %999 = vmatmul.mubr.msk.bf16.vlgmr.msra.gmra.mxu0 %vm337_vm1, %v314_v12 }
  0x96   : > { %v315_v13 = vpop.trf.xlu0 }
  0x97   : > { %1002 = vmatprep.mubr.msk.bf16.mxu0 %vm337_vm1, %v315_v13 }
  0x9a   : > { %v316_v14 = vpop.trf.xlu0 }
  0x9b   : > { %1003 = vmatmul.mubr.msk.bf16.gmra.mxu0 %vm337_vm1, %v316_v14 }
  0x9e   : > { %v317_v15 = vpop.trf.xlu0 }
  0x9f   : > { %1006 = vmatprep.mubr.msk.bf16.mxu0 %vm337_vm1, %v317_v15 }
  0xa2   : > { %v318_v16 = vpop.trf.xlu0 }
  0xa3   : > { %1007 = vmatmul.mubr.msk.bf16.gmra.mxu0 %vm337_vm1, %v318_v16 }
  0xa4   : > { %v1342_v28 = vpop.permute.xlu1 %555 }
  0xa6   : > { %v319_v17 = vpop.trf.xlu0 }
  0xa7   : > { %1010 = vmatprep.mubr.msk.bf16.mxu0 %vm337_vm1, %v319_v17 }
  0xaa   : > { %v320_v18 = vpop.trf.xlu0 }
  0xab   : > { %1011 = vmatmul.mubr.msk.bf16.gmra.mxu0 %vm337_vm1, %v320_v18 }
  0xae   : > { %v329_v19 = vpop.trf.xlu0 }
  0xaf   : > { %1014 = vmatprep.mubr.msk.bf16.mxu0 %vm337_vm1, %v329_v19 }
  0xb2   : > { %v330_v20 = vpop.trf.xlu0 }
  0xb3   : > { %1015 = vmatmul.mubr.msk.bf16.gmra.mxu0 %vm337_vm1, %v330_v20 }
  0xb6   : > { %v331_v21 = vpop.trf.xlu0 }
  0xb7   : > { %1018 = vmatprep.mubr.msk.bf16.mxu0 %vm337_vm1, %v331_v21 }
  0xba   : > { %v332_v22 = vpop.trf.xlu0 }
  0xbb   : > { %1019 = vmatmul.mubr.msk.bf16.gmra.mxu0 %vm337_vm1, %v332_v22 }
  0xbe   : > { %v333_v23 = vpop.trf.xlu0 }
  0xbf   : > { %1022 = vmatprep.mubr.msk.bf16.mxu0 %vm337_vm1, %v333_v23 }
  0xc2   : > { %v334_v24 = vpop.trf.xlu0 }
  0xc3   : > { %1023 = vmatmul.mubr.msk.bf16.gmra.mxu0 %vm337_vm1, %v334_v24 }
  0xc6   : > { %v335_v25 = vpop.trf.xlu0 }
  0xc7   : > { %1026 = vmatprep.mubr.msk.bf16.mxu0 %vm337_vm1, %v335_v25 }
  0xca   : > { %v336_v26 = vpop.trf.xlu0 }
  0xcb   : > { %1027 = vmatmul.mubr.msk.bf16.gmra.mxu0 %vm337_vm1, %v336_v26 }
 0x147   : > { %v1340_v27 = vpop.f32.mrf.mxu1 }
 0x149   : > { %v619_v29 = vpop.f32.mrf.mxu1 }
 0x14a   : > { %v620_v30 = vadd.f32 %v619_v29, %v1342_v28 }
 0x14b   : > { %v621_v31 = vpop.f32.mrf.mxu1 }
 0x14c   : > { %v1345_v32 = vpack.c.bf16 %v620_v30, %v620_v30 }
 0x14d   : > { %v622_v34 = vpop.f32.mrf.mxu1 }
 0x14e   : > { %674 = vmatprep.mubr.bf16.mxu1 %v1345_v32 }
 0x153   : > { %v1000_v33 = vpop.f32.mrf.mxu0 }
 0x154   : > { %v1351_v38 = vadd.f32 %v1000_v33, %v1348_v35 }
 0x155   : > { %v424_v36 = vpop.f32.mrf.mxu0 }
 0x156   : > { %v1357_v41 = vadd.f32 %v1348_v35, %v424_v36 }
 0x157   : > { %v1001_v37 = vpop.f32.mrf.mxu0 }
 0x158   : > { %v1354_v39 = vadd.f32 %v1001_v37, %v1348_v35 }
 0x159   : > { %v427_v40 = vpop.f32.mrf.mxu0 }
 0x15a   : > { %v627_v42 = vpack.c.bf16 %v1354_v39, %v1351_v38  ;;  %v1362_v43 = vadd.f32 %v1348_v35, %v427_v40 }
 0x15b   : > { %v1004_v44 = vpop.f32.mrf.mxu0 }
 0x15c   : > { %v626_v45 = vpack.c.bf16 %v1362_v43, %v1357_v41  ;;  %v1367_v48 = vadd.f32 %v1004_v44, %v1348_v35 }
 0x15d   : > { %v440_v46 = vpop.f32.mrf.mxu0 }
 0x15e   : > { %v1373_v51 = vadd.f32 %v1348_v35, %v440_v46 }
 0x15f   : > { %v1005_v47 = vpop.f32.mrf.mxu0 }
 0x160   : > { %v1370_v49 = vadd.f32 %v1005_v47, %v1348_v35 }
 0x161   : > { %v443_v50 = vpop.f32.mrf.mxu0 }
 0x162   : > { %v629_v52 = vpack.c.bf16 %v1370_v49, %v1367_v48  ;;  %v1378_v53 = vadd.f32 %v1348_v35, %v443_v50  ;;  %v618_v48 = vadd.f32 %v1340_v27, %v1342_v28  ;;  %v704_v49 = vld [vmem:[%s1475_s5] sm:$0xf] }
 0x163   : > { %v1008_v54 = vpop.f32.mrf.mxu0 }
 0x164   : > { %v628_v55 = vpack.c.bf16 %v1378_v53, %v1373_v51  ;;  %v465_v40 = vadd.f32 %v1008_v54, %v1348_v35  ;;  %v1191_v51 = vmov 0.0  }
 0x165   : > { %v456_v56 = vpop.f32.mrf.mxu0 }
 0x167   : > { %v1009_v57 = vpop.f32.mrf.mxu0 }
 0x168   : > { %v468_v33 = vadd.f32 %v1009_v57, %v1348_v35 }
 0x169   : > { %v459_v58 = vpop.f32.mrf.mxu0 }
 0x16a   : > { %v631_v46 = vpack.c.bf16 %v468_v33, %v465_v40  ;;  %v460_v47 = vadd.f32 %v1348_v35, %v459_v58 }
 0x16b   : > { %v1012_v59 = vpop.f32.mrf.mxu0 }
 0x16c   : > { %v481_v19 = vadd.f32 %v1012_v59, %v1348_v35 }
 0x16d   : > { %v472_v60 = vpop.f32.mrf.mxu0 }
 0x16e   : > { %v473_v30 = vadd.f32 %v1348_v35, %v472_v60  ;;  %v457_v60 = vadd.f32 %v1348_v35, %v456_v56 }
 0x16f   : > { %v1013_v61 = vpop.f32.mrf.mxu0 }
 0x170   : > { %v484_v15 = vadd.f32 %v1013_v61, %v1348_v35  ;;  %v630_v61 = vpack.c.bf16 %v460_v47, %v457_v60 }
 0x171   : > { %v475_v62 = vpop.f32.mrf.mxu0 }
 0x172   : > { %v633_v24 = vpack.c.bf16 %v484_v15, %v481_v19  ;;  %v476_v25 = vadd.f32 %v1348_v35, %v475_v62 }
 0x173   : > { %v1016_v63 = vpop.f32.mrf.mxu0 }
 0x174   : > { %v632_v34 = vpack.c.bf16 %v476_v25, %v473_v30  ;;  %v497_v56 = vadd.f32 %v1016_v63, %v1348_v35 }
 0x175   : > { %v488_v1 = vpop.f32.mrf.mxu0 }
 0x177   : > { %v1017_v2 = vpop.f32.mrf.mxu0 }
 0x179   : > { %v491_v3 = vpop.f32.mrf.mxu0 }
 0x17b   : > { %v1020_v4 = vpop.f32.mrf.mxu0 }
 0x17c   : > { %v513_v57 = vadd.f32 %v1020_v4, %v1348_v35 }
 0x17d   : > { %v504_v5 = vpop.f32.mrf.mxu0 }
 0x17f   : > { %v1021_v6 = vpop.f32.mrf.mxu0 }
 0x180   : > { %v516_v50 = vadd.f32 %v1021_v6, %v1348_v35  ;;  %v492_v6 = vadd.f32 %v1348_v35, %v491_v3 }
 0x181   : > { %v507_v7 = vpop.f32.mrf.mxu0 }
 0x182   : > { %v637_v62 = vpack.c.bf16 %v516_v50, %v513_v57  ;;  %v508_v54 = vadd.f32 %v1348_v35, %v507_v7 }
 0x183   : > { %v1024_v8 = vpop.f32.mrf.mxu0 }
 0x184   : > { %v529_v31 = vadd.f32 %v1024_v8, %v1348_v35  ;;  %v505_v8 = vadd.f32 %v1348_v35, %v504_v5  ;;  %v489_v5 = vadd.f32 %v1348_v35, %v488_v1 }
 0x185   : > { %v520_v10 = vpop.f32.mrf.mxu0 }
 0x186   : > { %v521_v44 = vadd.f32 %v1348_v35, %v520_v10  ;;  %v500_v10 = vadd.f32 %v1017_v2, %v1348_v35  ;;  %v636_v58 = vpack.c.bf16 %v508_v54, %v505_v8  ;;  %v634_v7 = vpack.c.bf16 %v492_v6, %v489_v5 }
 0x187   : > { %v1025_v11 = vpop.f32.mrf.mxu0 }
 0x188   : > { %v532_v26 = vadd.f32 %v1025_v11, %v1348_v35  ;;  %v635_v4 = vpack.c.bf16 %v500_v10, %v497_v56 }
 0x189   : > { %v523_v12 = vpop.f32.mrf.mxu0 }
 0x18a   : > { %v639_v36 = vpack.c.bf16 %v532_v26, %v529_v31  ;;  %v524_v37 = vadd.f32 %v1348_v35, %v523_v12 }
 0x18b   : > { %v1028_v13 = vpop.f32.mrf.mxu0 }
 0x18c   : > { %v545_v17 = vadd.f32 %v1028_v13, %v1348_v35  ;;  %v638_v59 = vpack.c.bf16 %v524_v37, %v521_v44 }
 0x18d   : > { %v536_v14 = vpop.f32.mrf.mxu0 }
 0x18e   : > { %v537_v21 = vadd.f32 %v1348_v35, %v536_v14 }
 0x18f   : > { %v1029_v16 = vpop.f32.mrf.mxu0 }
 0x190   : > { %v548_v18 = vadd.f32 %v1029_v16, %v1348_v35 }
 0x191   : > { %v539_v20 = vpop.f32.mrf.mxu0 }
 0x192   : > { %v641_v22 = vpack.c.bf16 %v548_v18, %v545_v17  ;;  %v540_v23 = vadd.f32 %v1348_v35, %v539_v20  ;;  %v624_v35 = vpack.c.bf16 %v618_v48, %v618_v48 }
 0x194   : > { %v640_v29 = vpack.c.bf16 %v540_v23, %v537_v21  ;;  %972 = vmatprep.subr.bf16.mxu1 %v641_v22  ;;  %v779_v22 = vsel %vm708_vm2, %v624_v35, 0  ;;  %v753_v23 = vld [vmem:[%s1476_s6] sm:$0xf] }
 0x195   : > { %973 = vmatpush3.bf16.msra.mxu1 %v633_v24  ;;  %756 = vperm.xlu0 %1091, %v753_v23  }
 0x196   : > { %974 = vmatprep.subr.bf16.mxu1 %v640_v29 }
 0x199   : > { %975 = vmatpush3.bf16.msra.mxu1 %v632_v34 }
 0x19a   : > { %976 = vmatprep.subr.bf16.mxu1 %v639_v36 }
 0x19d   : > { %977 = vmatpush3.bf16.msra.mxu1 %v631_v46 }
 0x19e   : > { %978 = vmatprep.subr.bf16.mxu1 %v638_v59 }
 0x1a1   : > { %979 = vmatpush3.bf16.msra.mxu1 %v630_v61 }
 0x1a2   : > { %980 = vmatprep.subr.bf16.mxu1 %v637_v62 }
 0x1a5   : > { %981 = vmatpush3.bf16.msra.mxu1 %v629_v52  ;;  %v710_v52 = vsel %vm708_vm2, %v704_v49, 0 }
 0x1a6   : > { %982 = vmatprep.subr.bf16.mxu1 %v636_v58 }
 0x1a9   : > { %983 = vmatpush3.bf16.msra.mxu1 %v628_v55 }
 0x1aa   : > { %984 = vmatprep.subr.bf16.mxu1 %v635_v4 }
 0x1ad   : > { %985 = vmatpush3.bf16.msra.mxu1 %v627_v42 }
 0x1ae   : > { %986 = vmatprep.subr.bf16.mxu1 %v634_v7 }
 0x1b1   : > { %987 = vmatpush3.bf16.msra.mxu1 %v626_v45 }
 0x1b2   : > { %1030 = vmatprep.subr.bf16.mxu1 %v1191_v51 }
 0x1b4   : > { %675 = vmatmul.mubr.bf16.vlgmr.msra.gmra.mxu1 %v624_v35 }
 0x1b5   : > { %1031 = vmatpush3.bf16.msra.mxu1 %v710_v52  ;;  %1032 = vmatprep.mubr.msk.bf16.mxu1 %vm1192_vm3, %v1191_v51 }
 0x1b6   : > { %946 = vmatprep.subr.msk.bf16.mxu1 %vm708_vm2, %v1345_v32 }
 0x210   : > { %v757_v33 = vpop.permute.xlu0 %756 }
 0x274   : > { %v988_v27 = vpop.f32.mrf.mxu1 }
 0x276   : > { %v989_v28 = vpop.f32.mrf.mxu1 }
 0x277   : > { %v990_v38 = vadd.f32 %v989_v28, %v988_v27 }
 0x278   : > { %v991_v39 = vpop.f32.mrf.mxu1 }
 0x279   : > { %v682_v41 = vmul.f32 0.0625, %v990_v38 }
 0x27a   : > { %v992_v42 = vpop.f32.mrf.mxu1 }
 0x27b   : > { %v684_v43 = vsel %vm683_vm4, %v682_v41, -inf }
 0x27c   : > { %v685_v45 = vrot.slane %v684_v43, 4 }
 0x27e   : > { %v686_v53 = vmax.f32 %v684_v43, %v685_v45 }
 0x280   : > { %v687_v55 = vrot.slane %v686_v53, 2 }
 0x282   : > { %v688_v63 = vmax.f32 %v686_v53, %v687_v55 }
 0x284   : > { %v689_v1 = vrot.slane %v688_v63, 1 }
 0x286   : > { %v690_v2 = vmax.f32 %v688_v63, %v689_v1 }
 0x288   : > { %v691_v3 = vsub.f32 %v682_v41, %v690_v2 }
 0x28a   : > { %v692_v11 = vmul.f32 1.442695, %v691_v3 }
 0x28c   : > { %1093 = vpow2.f32 %v692_v11 }
 0x299   : > { %v1094_v32 = vpop.eup %1093 }
 0x29a   : > { %v694_v12 = vsel %vm683_vm4, %v1094_v32, 0.0 }
 0x29b   : > { %v695_v13 = vrot.slane %v694_v12, 4 }
 0x29d   : > { %v696_v14 = vadd.f32 %v695_v13, %v694_v12 }
 0x29f   : > { %v697_v15 = vrot.slane %v696_v14, 2 }
 0x2a1   : > { %v698_v16 = vadd.f32 %v697_v15, %v696_v14 }
 0x2a3   : > { %v699_v17 = vrot.slane %v698_v16, 1 }
 0x2a5   : > { %v700_v18 = vadd.f32 %v699_v17, %v698_v16 }
 0x2a7   : > { %1095 = vrcp.f32 %v700_v18 }
 0x2b4   : > { %v1096_v19 = vpop.eup %1095 }
 0x2b5   : > { %v702_v20 = vmul.f32 %v1096_v19, %v1094_v32 }
 0x2b7   : > { %v703_v21 = vpack.c.bf16 %v702_v20, %v702_v20 }
 0x2b9   : > { %1033 = vmatmul.mubr.msk.bf16.vlgmr.msra.gmra.mxu1 %vm683_vm4, %v703_v21 }
 0x2ba   : > { %799 = vmatpush1.bf16.msra.mxu1 %v779_v22  ;;  %816 = vmatprep.mubr.bf16.mxu1 %v1190_v9 }
 0x379   : > { %v746_v24 = vpop.f32.mrf.mxu1 }
 0x37a   : > { %v752_v25 = vpack.c.bf16 %v746_v24, %v746_v24 }
 0x37b   : > { %v1034_v26 = vpop.f32.mrf.mxu1 }
 0x37c   : > { %759 = vxpose.xlu1.c.b16.start.end [1/1] (short) (narrow) %v752_v25, 16 }
 0x37d   : > { %v749_v29 = vpop.f32.mrf.mxu1 }
 0x37f   : > { %v1035_v30 = vpop.f32.mrf.mxu1 }
 0x3de   : > { %v767_v31 = vpop.trf.xlu1 }
 0x3df   : > { %947 = vmatmul.mubr.msk.bf16.vlgmr.msra.gmra.mxu1 %vm683_vm4, %v767_v31 }
 0x49f   : > { %v818_v34 = vpop.f32.mrf.mxu1 }
 0x4a0   : > { %v819_v36 = vadd.f32 %v818_v34, %v757_v33 }
 0x4a1   : > { %v820_v9 = vpop.f32.mrf.mxu1 }
 0x4a2   : > { %v821_v37 = vadd.f32 %v820_v9, %v757_v33 }
 0x4a3   : > { %v822_v40 = vpop.f32.mrf.mxu1 }
 0x4a4   : > { %v827_v44 = vcombine.low %v819_v36, %v821_v37 }
 0x4a5   : > { %v823_v46 = vpop.f32.mrf.mxu1 }
 0x4a6   : > { %v829_v47 = vadd.f32 %v827_v44, %v1305_v0 }
 0x4a8   : > { %830 = vst [vmem:[%s284_s29] sm:$0xff] %v829_v47 }
 0x4a9   : > { %1136 = shalt.err (!%p1133_p2)
}
 0x4aa   : > { %s1137_s19 = scalar_lea.hbm %s844_s14, 128  ;;  %s1141_s22 = scalar_lea.hbm %s1477_s7, 256 }
 0x4ab   : > { %p1138_p3 = scmp.ne.s32.totalorder %s844_s14, %s1137_s19  ;;  %p1142_p8 = scmp.lt.s32.totalorder %s844_s14, %s1477_s7 }
 0x4ac   : > { %p1143_p11 = scmp.lt.s32.totalorder %s1141_s22, %s1137_s19 }
 0x4ad   : > { %p1139_p4 = pnand %p1138_p3, %p1272_p5 }
 0x4ae   : > { %p1144_p9 = por %p1143_p11, %p1142_p8 }
 0x4af   : > { %p1140_p7 = pneg %p1139_p4 }
 0x4b1   : > { %p1145_p10 = pnand %p1144_p9, %p1140_p7 }
 0x4b3   : > { %1148 = shalt.err (!%p1145_p10)
}
 0x4b4   : > { %1041 = dma.vmem_to_hbm [thread:$0]  (%p1272_p5), %s847_s8, 128, %s844_s14, %s832_s15  }
 0x4b5 PF: > { %p1053_p12 = scmp.ge.s32.totalorder %s1187_s27, 2  ;;  %s858_s9 = sand.u32 1, %s1175_s24  }
 0x4b6   : > { %s859_s13 = scalar_lea.sflag [#allocation4], %s858_s9 }
 0x4b7   : > { %p1048_p13 = pnand %p1053_p12, %p1276_p6 }
 0x4b9   : > { %p1049_p0 = pneg %p1048_p13 }
 0x4bb   : > { %1170 = dma.done.wait (%p1049_p0), %s859_s13, 128  }
 0x4bc   : > { %1172 = vsyncadd (%p1049_p0), %s859_s13, 4294967168  ;;  %p18_p1 = scmp.ge.s32.totalorder %s1259_s30, 4   ;;  %s1481_s24 = smov %s1179_s25 }
 0x4bd   : > { %s1482_s25 = smov %s1183_s26  ;;  %s1483_s26 = smov %s1270_s10 }
 0x4be   : > { %s1484_s27 = smov %s1259_s30  ;;  %20 = sbr.rel (!%p18_p1) target bundleno = 4 (0x4), region = 88 }
 0x4c3   :  { %864 = vsyncpa [#allocation3], 1 }
 0x4c4   :  { %866 = vsyncpa [#allocation3 + $0x1], 1 }
 0x4c5   :  { %867 = vsyncpa [#allocation4], 1 }
 0x4c6   :  { %869 = vsyncpa [#allocation4 + $0x1], 1 }

</bundles_post_ra>
